<compile_context>
chip_gen: v7x
topology: tpu7x:2x2x1
jax: 0.10.0
libtpu: 0.0.40
codegen_flags: <defaults>
</compile_context>

<pallas_src>
from functools import partial

import jax
import jax.numpy as jnp
import numpy as np
from jax import lax
from jax.experimental import pallas as pl
from jax.experimental.pallas import tpu as pltpu


def _round_up(n, m):
    return ((n + m - 1) // m) * m


def _conv2dmod_kernel(p_ref, ymod_ref, w_ref, o_ref, wmod_ref, *, demod, eps):
    """One (batch, spatial-tile) grid step.

    p_ref    : (1, tM, K2Cp)     im2col patch rows for this tile (mxu dtype)
    ymod_ref : (1, K2Cp, 1)      per-row modulation factor (y+1, tiled), f32
    w_ref    : (K2Cp, Coutp)     shared unmodulated weight columns, f32
    o_ref    : (1, tM, Coutp)    output tile
    wmod_ref : (K2Cp, Coutp)     VMEM scratch caching the modulated weights
    """
    # --- modulate + demodulate the weights once per batch element ------------
    @pl.when(pl.program_id(1) == 0)
    def _():
        wm = w_ref[...] * ymod_ref[0]                       # f32 math
        if demod:
            d = lax.rsqrt(jnp.sum(wm * wm, axis=0, keepdims=True) + eps)
            wm = wm * d
        wmod_ref[...] = wm.astype(wmod_ref.dtype)           # cast to MXU dtype

    # --- fused conv: one MXU matmul over the K*K*Cin contraction --------------
    o_ref[0] = jnp.dot(
        p_ref[0], wmod_ref[...], preferred_element_type=jnp.float32
    ).astype(o_ref.dtype)


def conv2d_mod(x, y, weight, *, demod=True, stride=1, dilation=1, eps=1e-8,
               mxu_dtype=None, tile_m=512):
    """x: (B, Cin, H, W) NCHW, y: (B, Cin), weight: (Cout, Cin, K, K). Returns NCHW."""
    assert stride == 1  # TODO(synk): see header note.
    b, c, h, w = x.shape
    cout, cin, K, _ = weight.shape
    assert cin == c

    pad = ((h - 1) * (stride - 1) + dilation * (K - 1)) // 2
    Ho = h + 2 * pad - dilation * (K - 1)
    Wo = w + 2 * pad - dilation * (K - 1)

    if mxu_dtype is None:
        mxu_dtype = x.dtype           # bf16 in -> bf16 MXU; f32 in -> f32 MXU

    k2c = K * K * cin
    k2c_p = _round_up(k2c, 128)       # lane-dense contraction dim
    cout_p = _round_up(cout, 128)     # lane-dense output dim (>=128 MXU N tile)
    M = Ho * Wo
    tM = min(tile_m, _round_up(M, 8))
    M_p = _round_up(M, tM)
    nM = M_p // tM

    # ---- wrapper-side im2col (XLA): (B, M, K*K*Cin), tap-major / cin-minor ----
    x_nhwc = jnp.transpose(x, (0, 2, 3, 1))                              # (B,H,W,Cin)
    x_sp = jnp.pad(x_nhwc, ((0, 0), (pad, pad), (pad, pad), (0, 0)))     # (B,Hp,Wp,Cin)
    taps = []
    for kh in range(K):
        for kw in range(K):
            r0, c0 = kh * dilation, kw * dilation
            taps.append(x_sp[:, r0:r0 + Ho, c0:c0 + Wo, :])
    patches = jnp.concatenate(taps, axis=-1).reshape(b, M, k2c)
    patches = jnp.pad(patches, ((0, 0), (0, M_p - M), (0, k2c_p - k2c)))
    patches = patches.astype(mxu_dtype)                                  # (B,Mp,K2Cp)

    # ---- weight as a (K*K*Cin, Cout) column matrix, zero-padded --------------
    wcol = jnp.transpose(weight, (2, 3, 1, 0)).reshape(k2c, cout).astype(jnp.float32)
    wcol = jnp.pad(wcol, ((0, k2c_p - k2c), (0, cout_p - cout)))         # (K2Cp,Coutp)

    # ---- per-row modulation vector: (y + 1) tiled over the K*K taps -----------
    ymod = jnp.tile(y.astype(jnp.float32) + 1.0, (1, K * K))             # (B, K2*Cin)
    ymod = jnp.pad(ymod, ((0, 0), (0, k2c_p - k2c))).reshape(b, k2c_p, 1)

    kernel = partial(_conv2dmod_kernel, demod=demod, eps=eps)

    out = pl.pallas_call(
        kernel,
        out_shape=jax.ShapeDtypeStruct((b, M_p, cout_p), x.dtype),
        grid_spec=pltpu.PrefetchScalarGridSpec(
            num_scalar_prefetch=0,
            grid=(b, nM),
            in_specs=[
                pl.BlockSpec((1, tM, k2c_p), lambda i, j: (i, j, 0)),
                pl.BlockSpec((1, k2c_p, 1), lambda i, j: (i, 0, 0)),
                pl.BlockSpec((k2c_p, cout_p), lambda i, j: (0, 0),
                             pipeline_mode=pl.Buffered(buffer_count=1)),
            ],
            out_specs=pl.BlockSpec((1, tM, cout_p), lambda i, j: (i, j, 0)),
            scratch_shapes=[pltpu.VMEM((k2c_p, cout_p), mxu_dtype)],
        ),
        compiler_params=pltpu.CompilerParams(
            dimension_semantics=("parallel", "arbitrary")),
    )(patches, ymod, wcol)

    out = out[:, :M, :cout].reshape(b, Ho, Wo, cout)
    return jnp.transpose(out, (0, 3, 1, 2))                              # NCHW


def _reference(x, y, weight, *, demod=True, dilation=1, eps=1e-8):
    """Pure-JAX reference mirroring the PyTorch forward (stride=1)."""
    b, c, h, w = x.shape
    cout, cin, K, _ = weight.shape
    pad = (dilation * (K - 1)) // 2
    outs = []
    for i in range(b):
        w_i = weight * (y[i][None, :, None, None] + 1.0)
        if demod:
            d = lax.rsqrt(jnp.sum(w_i * w_i, axis=(1, 2, 3), keepdims=True) + eps)
            w_i = w_i * d
        o = lax.conv_general_dilated(
            x[i:i + 1], w_i, window_strides=(1, 1),
            padding=[(pad, pad), (pad, pad)],
            rhs_dilation=(dilation, dilation),
            dimension_numbers=("NCHW", "OIHW", "NCHW"))
        outs.append(o)
    return jnp.concatenate(outs, axis=0)


if __name__ == "__main__":
    # Small deterministic setup consistent with Conv2DMod(in_chan=4, out_chan=8, kernel=3).
    B, Cin, H, W = 2, 4, 16, 16
    Cout, K = 8, 3

    key = jax.random.PRNGKey(0)
    kx, ky, kw = jax.random.split(key, 3)

    x = jax.random.normal(kx, (B, Cin, H, W), dtype=jnp.float32)
    y = jax.random.normal(ky, (B, Cin), dtype=jnp.float32)

    # kaiming_normal_(fan_in, leaky_relu, a=0): std = sqrt(2) / sqrt(Cin * K * K)
    fan_in = Cin * K * K
    std = float(np.sqrt(2.0 / fan_in))
    weight = jax.random.normal(kw, (Cout, Cin, K, K), dtype=jnp.float32) * std

    ref = jax.block_until_ready(_reference(x, y, weight, demod=True, dilation=1, eps=1e-8))

    # f32 path (exact check against the f32 reference).
    out = conv2d_mod(x, y, weight, demod=True, stride=1, dilation=1, eps=1e-8)
    out = jax.block_until_ready(out)
    assert out.shape == (B, Cout, H, W)
    np.testing.assert_allclose(np.asarray(out), np.asarray(ref), rtol=1e-4, atol=1e-4)

    # bf16 MXU path (production setting: mod/demod in f32, matmul in bf16, f32 accum).
    out_bf16 = conv2d_mod(x, y, weight, demod=True, stride=1, dilation=1, eps=1e-8,
                          mxu_dtype=jnp.bfloat16)
    out_bf16 = jax.block_until_ready(out_bf16)
    np.testing.assert_allclose(np.asarray(out_bf16), np.asarray(ref), rtol=5e-2, atol=5e-2)

    print("KERNEL_OK")
</pallas_src>

<mosaic_0001>
module attributes {stable_mosaic.version = 11 : i64} {
  func.func @_conv2dmod_kernel(%arg0: i32, %arg1: i32, %arg2: memref<1x256x128xf32, #tpu.memory_space<vmem>>, %arg3: memref<1x128x1xf32, #tpu.memory_space<vmem>>, %arg4: memref<128x128xf32, #tpu.memory_space<vmem>>, %arg5: memref<1x256x128xf32, #tpu.memory_space<vmem>>, %arg6: memref<128x128xf32, #tpu.memory_space<vmem>>) attributes {dimension_semantics = [#tpu.dimension_semantics<parallel>, #tpu.dimension_semantics<arbitrary>], iteration_bounds = array<i64: 2, 1>, scalar_prefetch = 0 : i64, scratch_operands = 1 : i64, tpu.core_type = #tpu.core_type<tc>, window_params = [{transform_indices = @transform_0, window_bounds = array<i64: 1, 256, 128>}, {transform_indices = @transform_1, window_bounds = array<i64: 1, 128, 1>}, {pipeline_mode = #tpu.pipeline_mode<synchronous>, transform_indices = @transform_2, window_bounds = array<i64: 128, 128>}, {transform_indices = @transform_3, window_bounds = array<i64: 1, 256, 128>}]} {
    %c0_i32 = arith.constant 0 : i32
    %0 = arith.cmpi eq, %arg1, %c0_i32 : i32
    %1 = arith.extui %0 : i1 to i32
    %c0_i32_0 = arith.constant 0 : i32
    %2 = arith.cmpi ne, %1, %c0_i32_0 : i32
    scf.if %2 {
      %c0_8 = arith.constant 0 : index
      %c0_9 = arith.constant 0 : index
      %10 = vector.load %arg4[%c0_8, %c0_9] : memref<128x128xf32, #tpu.memory_space<vmem>>, vector<128x128xf32>
      %c0_10 = arith.constant 0 : index
      %c0_11 = arith.constant 0 : index
      %c0_12 = arith.constant 0 : index
      %11 = vector.load %arg3[%c0_10, %c0_11, %c0_12] : memref<1x128x1xf32, #tpu.memory_space<vmem>>, vector<1x128x1xf32>
      %12 = vector.shape_cast %11 : vector<1x128x1xf32> to vector<128x1xf32>
      %13 = vector.broadcast %12 : vector<128x1xf32> to vector<128x128xf32>
      %14 = arith.mulf %10, %13 : vector<128x128xf32>
      %15 = arith.mulf %14, %14 : vector<128x128xf32>
      %cst_13 = arith.constant dense<0.000000e+00> : vector<128xf32>
      %16 = vector.multi_reduction <add>, %15, %cst_13 [0] : vector<128x128xf32> to vector<128xf32>
      %17 = vector.shape_cast %16 : vector<128xf32> to vector<1x128xf32>
      %cst_14 = arith.constant 9.99999993E-9 : f32
      %18 = vector.broadcast %cst_14 : f32 to vector<1x128xf32>
      %19 = arith.addf %17, %18 : vector<1x128xf32>
      %20 = math.rsqrt %19 : vector<1x128xf32>
      %21 = vector.broadcast %20 : vector<1x128xf32> to vector<128x128xf32>
      %22 = arith.mulf %14, %21 : vector<128x128xf32>
      %c0_15 = arith.constant 0 : index
      %c0_16 = arith.constant 0 : index
      %23 = vector.load %arg6[%c0_15, %c0_16] : memref<128x128xf32, #tpu.memory_space<vmem>>, vector<128x128xf32>
      tpu.vector_store %arg6[%c0_15, %c0_16], %22 {strides = array<i32>} : memref<128x128xf32, #tpu.memory_space<vmem>>, vector<128x128xf32>,
    } else {
    }
    %c0 = arith.constant 0 : index
    %c0_1 = arith.constant 0 : index
    %c0_2 = arith.constant 0 : index
    %3 = vector.load %arg2[%c0, %c0_1, %c0_2] : memref<1x256x128xf32, #tpu.memory_space<vmem>>, vector<1x256x128xf32>
    %4 = vector.shape_cast %3 : vector<1x256x128xf32> to vector<256x128xf32>
    %c0_3 = arith.constant 0 : index
    %c0_4 = arith.constant 0 : index
    %5 = vector.load %arg6[%c0_3, %c0_4] : memref<128x128xf32, #tpu.memory_space<vmem>>, vector<128x128xf32>
    %cst = arith.constant dense<0.000000e+00> : vector<256x128xf32>
    %6 = tpu.matmul %4, %5, %cst {dimension_numbers = #tpu.dot_dimension_numbers<[1], [0], [0], [1], [0, 0, 1, 1], [], []>} : vector<256x128xf32>, vector<128x128xf32>, vector<256x128xf32> -> vector<256x128xf32>
    %c0_5 = arith.constant 0 : index
    %c0_6 = arith.constant 0 : index
    %c0_7 = arith.constant 0 : index
    %7 = vector.load %arg5[%c0_5, %c0_6, %c0_7] : memref<1x256x128xf32, #tpu.memory_space<vmem>>, vector<1x256x128xf32>
    %8 = vector.shape_cast %7 : vector<1x256x128xf32> to vector<256x128xf32>
    %9 = vector.shape_cast %6 : vector<256x128xf32> to vector<1x256x128xf32>
    tpu.vector_store %arg5[%c0_5, %c0_6, %c0_7], %9 {strides = array<i32>} : memref<1x256x128xf32, #tpu.memory_space<vmem>>, vector<1x256x128xf32>,
    return
  }
  func.func @transform_0(%arg0: i32, %arg1: i32) -> (i32, i32, i32) {
    %c0_i32 = arith.constant 0 : i32
    %c0_i32_0 = arith.constant 0 : i32
    return %arg0, %arg1, %c0_i32 : i32, i32, i32
  }
  func.func @transform_1(%arg0: i32, %arg1: i32) -> (i32, i32, i32) {
    %c0_i32 = arith.constant 0 : i32
    %c0_i32_0 = arith.constant 0 : i32
    %c0_i32_1 = arith.constant 0 : i32
    return %arg0, %c0_i32, %c0_i32_0 : i32, i32, i32
  }
  func.func @transform_2(%arg0: i32, %arg1: i32) -> (i32, i32) {
    %c0_i32 = arith.constant 0 : i32
    %c0_i32_0 = arith.constant 0 : i32
    %c0_i32_1 = arith.constant 0 : i32
    return %c0_i32, %c0_i32_0 : i32, i32
  }
  func.func @transform_3(%arg0: i32, %arg1: i32) -> (i32, i32, i32) {
    %c0_i32 = arith.constant 0 : i32
    %c0_i32_0 = arith.constant 0 : i32
    return %arg0, %arg1, %c0_i32 : i32, i32, i32
  }
}

</mosaic_0001>

<bundles_post_ra>
// kernel: tpu_custom_call.1
= control target key start
LH: loop header
LB: loop body
LE: loop exit
PB: predicated region body
PF: predicated region fallthrough
CT: control target
= control target key end

     0   :  { %8 = vsyncpa [#allocation4], 0  ;;  %s1626_s0 = inlined_call_operand.hbm [shape: f32[2,256,128], index: 0, kind: input, shape index: {}]   ;;  %s1627_s1 = inlined_call_operand.vmem [shape: f32[2,128,1], index: 1, kind: input, shape index: {}]   ;;  %s1628_s2 = inlined_call_operand.vmem [shape: f32[128,128], index: 2, kind: input, shape index: {}]   ;;  %s1629_s3 = inlined_call_operand.hbm [shape: f32[2,256,128], index: 3, kind: output, shape index: {}]  }
   0x1   :  { %10 = vsyncpa [#allocation4 + $0x1], 0 }
   0x2   :  { %11 = vsyncpa [#allocation5], 0 }
   0x3   :  { %13 = vsyncpa [#allocation5 + $0x1], 0  ;;  %s1260_s12 = smov 0   ;;  %s1262_s13 = smov 0  }
   0x4   :  { %s1264_s14 = smov 0   ;;  %s1266_s15 = smov 0  }
   0x5   :  { %s1268_s16 = smov 0   ;;  %s1270_s17 = smov 0  }
   0x6 LB: > { %s852_s18 = sadd.s32 4294967295, %s1231_s17   ;;  %s853_s19 = sadd.s32 4294967294, %s1231_s17   ;;  %s1231_s17 = sphi %s1270_s17, %s19_s17   ;;  %s1227_s16 = sphi %s1268_s16, %s1644_s16   ;;  %s1223_s15 = sphi %s1266_s15, %s1643_s15   ;;  %s1219_s14 = sphi %s1264_s14, %s1642_s14   ;;  %s1215_s13 = sphi %s1262_s13, %s1641_s13   ;;  %s1211_s12 = sphi %s1260_s12, %s1640_s12  }
   0x7   : > { %s31_s20 = sadd.s32 1, %s1227_s16  ;;  %s40_s21 = sadd.s32 1, %s1219_s14 }
   0x8   : > { %p33_p0 = scmp.ge.s32.totalorder %s31_s20, 2  ;;  %p47_p1 = scmp.ne.s32.totalorder %s1219_s14, %s1215_s13 }
   0x9   : > { %p48_p2 = scmp.eq.s32.totalorder %s1231_s17, 0  ;;  %p53_p3 = scmp.ne.s32.totalorder %s1215_s13, %s1211_s12 }
   0xa   : > { %s1646_s20 = smov (%p33_p0, %s31_s20), 0  ;;  %p54_p5 = scmp.eq.s32.totalorder %s852_s18, 0 }
   0xb   : > { %p1301_p4 = por %p48_p2, %p47_p1  ;;  %s35_s23 = ssub.s32 %s1227_s16, %s1646_s20 }
   0xc   : > { %p126_p6 = scmp.eq.s32.totalorder %s852_s18, 1  ;;  %p38_p7 = scmp.eq.s32.totalorder %s35_s23, 0 }
   0xd   : > { %p1307_p8 = por %p54_p5, %p53_p3  ;;  %p132_p10 = scmp.eq.s32.totalorder %s853_s19, 1 }
   0xe   : > { %p1311_p9 = por %p126_p6, %p47_p1  ;;  %p1060_p13 = scmp.lt.s32.totalorder %s1231_s17, 2 }
   0xf   : > { %s1316_s26 = scalar_select %p38_p7, %s1219_s14, %s40_s21  }
  0x10   : > { %s1633_s25 = scalar_select %p1311_p9, 1, 0 }
  0x11   : > { %p1318_p11 = por %p132_p10, %p53_p3  ;;  %s155_s28 = sand.u32 1, %s1219_s14  }
  0x12   : > { %s856_s29 = sshll.u32 %s155_s28, 8  ;;  %s869_s30 = sshll.u32 %s1227_s16, 12 }
  0x13   : > { %s1634_s27 = scalar_select %p1318_p11, 1, 0 }
  0x14   : > { %s1329_s6 = scalar_lea.hbm %s1626_s0, %s869_s30  ;;  %s159_s7 = scalar_lea.vmem [#allocation3], %s856_s29 }
  0x15   : > { %s168_s8 = sshll.u32 %s159_s7, 4  ;;  %p1335_p0 = pnand %p1060_p13, %p1301_p4  ;;  %s1331_s8 = int_to_ptr.vmem [resolvable:$true] %s168_s8 }
  0x16   : > { %s1340_s10 = scalar_lea.sflag [#allocation4], %s155_s28  ;;  %s1119_s11 = scalar_lea.hbm %s1329_s6, 4096 }
  0x17   : > { %p1120_p2 = scmp.ne.s32.totalorder %s1329_s6, %s1119_s11  ;;  %p1121_p3 = pneg %p1335_p0 }
  0x18   : > { %s1124_s21 = scalar_lea.hbm %s1626_s0, 8192  ;;  %p1125_p4 = scmp.lt.u32.totalorder %s1329_s6, %s1626_s0 }
  0x19   : > { %p1122_p5 = pnand %p1121_p3, %p1120_p2  ;;  %p1126_p7 = scmp.lt.u32.totalorder %s1124_s21, %s1119_s11 }
  0x1a   : > { %p1128_p13 = scmp.lt.u32.totalorder %s1119_s11, %s1329_s6 }
  0x1b   : > { %p1123_p6 = pneg %p1122_p5  ;;  %p1127_p10 = por %p1126_p7, %p1125_p4 }
  0x1d   : > { %p1129_p12 = por %p1128_p13, %p1127_p10 }
  0x1f   : > { %p1130_p1 = pnand %p1129_p12, %p1123_p6 }
  0x21   : > { %1133 = shalt.err (!%p1130_p1)
}
  0x22   : > { %s1134_s28 = scalar_lea.vmem %s1331_s8, 4096  ;;  %s1233_s29 = smov [#allocation3]  }
  0x23   : > { %p1135_p2 = scmp.ne.s32.totalorder %s1331_s8, %s1134_s28  ;;  %s1139_s30 = sshll.u32 %s1233_s29, 4  ;;  %s1140_s30 = int_to_ptr.vmem [resolvable:$false] %s1139_s30 }
  0x24   : > { %s1141_s4 = scalar_lea.vmem %s1140_s30, 8192  ;;  %p1142_p9 = scmp.lt.s32.totalorder %s1331_s8, %s1140_s30 }
  0x25   : > { %p1137_p5 = pnand %p1135_p2, %p1121_p3  ;;  %p1143_p4 = scmp.lt.s32.totalorder %s1141_s4, %s1134_s28 }
  0x27   : > { %p1138_p11 = pneg %p1137_p5  ;;  %p1144_p7 = por %p1143_p4, %p1142_p9 }
  0x29   : > { %p1145_p10 = pnand %p1144_p7, %p1138_p11 }
  0x2b   : > { %1148 = shalt.err (!%p1145_p10)
}
  0x2c   : > { %s1234_s5 = smov 128   ;;  %s1235_s7 = smov 8  }
  0x2d   : > { %1055 = dma.hbm_to_vmem [thread:$0]  (!%p1335_p0), %s1329_s6, 4096, %s1331_s8, %s1340_s10, %s1234_s5, %s1234_s5, %s1235_s7  }
  0x2e   : > { %p184_p12 = scmp.lt.s32.totalorder %s1231_s17, 3  ;;  %p1636_p1 = scmp.ge.s32.totalorder %s1231_s17, 1 }
  0x30   : > { %p185_p3 = pnand %p1636_p1, %p184_p12 }
  0x31   : > { %s1372_s11 = sand.u32 (!%p185_p3), 1, %s1215_s13  }
  0x32   : > { %188 = sbr.rel (%p185_p3) target bundleno = 548 (0x224), region = 32  ;;  %s860_s18 = sshll.u32 (!%p185_p3), %s1372_s11, 8 }
  0x33   : > { %s191_s19 = scalar_lea.sflag (!%p185_p3), [#allocation4], %s1372_s11  ;;  %s1378_s21 = scalar_lea.vmem (!%p185_p3), [#allocation3], %s860_s18 }
  0x39   : > { %1202 = dma.done.wait (%p1307_p8), %s191_s19, 4096  }
  0x3a   : > { %1204 = vsyncadd (%p1307_p8), %s191_s19, 4294963200  ;;  %p223_p9 = scmp.lt.s32.totalorder %s1223_s15, 1  ;;  %v1236_v0 = vmov 0   ;;  %v432_v17 = vld [vmem:[%s1378_s21] sm:$0xff]  ;;  %v235_v22 = vld [vmem:[%s1628_s2 + $0x10] sm:$0xff]  ;;  %s1536_s30 = scalar_lea.vmem [#allocation6], %s860_s18 }
  0x3b   : > { %1116 = vset.pattern.permute.xlu1 %v1236_v0  ;;  %1115 = vset.pattern.permute.xlu0 %v1236_v0  ;;  %v448_v18 = vld [vmem:[%s1378_s21 + $0x80] sm:$0xff]  ;;  %v234_v23 = vld [vmem:[%s1628_s2 + $0x8] sm:$0xff]  ;;  %v236_v26 = vld [vmem:[%s1628_s2 + $0x18] sm:$0xff]  ;;  %s871_s18 = sshll.u32 %s1223_s15, 12  ;;  %p1637_p11 = scmp.ne.s32.totalorder %s1633_s25, 0 }
  0x3c   : > { %s224_s6 = scalar_select %p223_p9, %s1223_s15, 1  ;;  %952 = vmatprep.mubr.f32.mxu0 %v432_v17  ;;  %976 = vmatprep.mubr.f32.mxu1 %v448_v18  ;;  %v233_v21 = vld [vmem:[%s1628_s2] sm:$0xff]  ;;  %v238_v35 = vld [vmem:[%s1628_s2 + $0x28] sm:$0xff]  ;;  %v239_v40 = vld [vmem:[%s1628_s2 + $0x30] sm:$0xff] }
  0x3d   : > { %v237_v30 = vld [vmem:[%s1628_s2 + $0x20] sm:$0xff]  ;;  %v240_v45 = vld [vmem:[%s1628_s2 + $0x38] sm:$0xff]  ;;  %v242_v55 = vld [vmem:[%s1628_s2 + $0x48] sm:$0xff]  ;;  %s1571_s7 = scalar_lea.hbm %s1629_s3, %s871_s18  ;;  %s738_s15 = scalar_lea.sflag [#allocation5], %s1372_s11 }
  0x3e   : > { %s870_s8 = sshll.u32 %s224_s6, 7  ;;  %v241_v50 = vld [vmem:[%s1628_s2 + $0x40] sm:$0xff]  ;;  %v243_v60 = vld [vmem:[%s1628_s2 + $0x50] sm:$0xff]  ;;  %s1237_s6 = smov [#allocation6]  }
  0x3f   : > { %s227_s22 = scalar_lea.vmem %s1627_s1, %s870_s8  ;;  %s1153_s8 = sshll.u32 %s1237_s6, 4  ;;  %s1154_s8 = int_to_ptr.vmem [resolvable:$false] %s1153_s8 }
  0x40   : > { %v251_v1 = vld [vmem:[%s227_s22 + $0x10] sm:$0xff]  ;;  %v249_v2 = vld [vmem:[%s227_s22] sm:$0xff]  ;;  %v252_v3 = vld [vmem:[%s227_s22 + $0x18] sm:$0xff]  ;;  %s1155_s9 = scalar_lea.vmem %s1154_s8, 8192 }
  0x41   : > { %277 = vperm.xlu1 %1116, %v251_v1   ;;  %267 = vperm.xlu0 %1115, %v249_v2   ;;  %v250_v4 = vld [vmem:[%s227_s22 + $0x8] sm:$0xff]  ;;  %v253_v6 = vld [vmem:[%s227_s22 + $0x20] sm:$0xff]  ;;  %v256_v7 = vld [vmem:[%s227_s22 + $0x38] sm:$0xff] }
  0x42   : > { %v254_v5 = vld [vmem:[%s227_s22 + $0x28] sm:$0xff]  ;;  %v255_v8 = vld [vmem:[%s227_s22 + $0x30] sm:$0xff]  ;;  %v257_v10 = vld [vmem:[%s227_s22 + $0x40] sm:$0xff] }
  0x43   : > { %v258_v9 = vld [vmem:[%s227_s22 + $0x48] sm:$0xff]  ;;  %v260_v11 = vld [vmem:[%s227_s22 + $0x58] sm:$0xff]  ;;  %v259_v12 = vld [vmem:[%s227_s22 + $0x50] sm:$0xff] }
  0x44   : > { %v262_v13 = vld [vmem:[%s227_s22 + $0x68] sm:$0xff]  ;;  %v261_v14 = vld [vmem:[%s227_s22 + $0x60] sm:$0xff]  ;;  %v264_v15 = vld [vmem:[%s227_s22 + $0x78] sm:$0xff] }
  0x45   : > { %282 = vperm.xlu1 %1116, %v252_v3   ;;  %272 = vperm.xlu0 %1115, %v250_v4   ;;  %v263_v16 = vld [vmem:[%s227_s22 + $0x70] sm:$0xff]  ;;  %v244_v1 = vld [vmem:[%s1628_s2 + $0x58] sm:$0xff] }
  0x49   : > { %292 = vperm.xlu1 %1116, %v254_v5   ;;  %287 = vperm.xlu0 %1115, %v253_v6   ;;  %v245_v6 = vld [vmem:[%s1628_s2 + $0x60] sm:$0xff] }
  0x4d   : > { %302 = vperm.xlu1 %1116, %v256_v7   ;;  %297 = vperm.xlu0 %1115, %v255_v8  }
  0x51   : > { %312 = vperm.xlu1 %1116, %v258_v9   ;;  %307 = vperm.xlu0 %1115, %v257_v10  }
  0x55   : > { %322 = vperm.xlu1 %1116, %v260_v11   ;;  %317 = vperm.xlu0 %1115, %v259_v12   ;;  %v246_v11 = vld [vmem:[%s1628_s2 + $0x68] sm:$0xff] }
  0x59   : > { %332 = vperm.xlu1 %1116, %v262_v13   ;;  %327 = vperm.xlu0 %1115, %v261_v14  }
  0x5d   : > { %342 = vperm.xlu1 %1116, %v264_v15   ;;  %337 = vperm.xlu0 %1115, %v263_v16   ;;  %v247_v16 = vld [vmem:[%s1628_s2 + $0x70] sm:$0xff] }
  0xc0   : > { %v278_v19 = vpop.permute.xlu1 %277  ;;  %v268_v20 = vpop.permute.xlu0 %267 }
  0xc1   : > { %v1400_v24 = vmul.f32 %v268_v20, %v233_v21  ;;  %v1405_v28 = vmul.f32 %v278_v19, %v235_v22  ;;  %v248_v21 = vld [vmem:[%s1628_s2 + $0x78] sm:$0xff] }
  0xc3   : > { %v361_v31 = vmul.f32 %v1400_v24, %v1400_v24  ;;  %v363_v37 = vmul.f32 %v1405_v28, %v1405_v28 }
  0xc4   : > { %v283_v25 = vpop.permute.xlu1 %282  ;;  %v273_v27 = vpop.permute.xlu0 %272 }
  0xc5   : > { %v1407_v29 = vmul.f32 %v273_v27, %v234_v23  ;;  %v1414_v32 = vmul.f32 %v283_v25, %v236_v26 }
  0xc7   : > { %v362_v33 = vmul.f32 %v1407_v29, %v1407_v29  ;;  %v364_v41 = vmul.f32 %v1414_v32, %v1414_v32 }
  0xc8   : > { %v293_v34 = vpop.permute.xlu1 %292  ;;  %v288_v36 = vpop.permute.xlu0 %287 }
  0xc9   : > { %v377_v38 = vadd.f32 %v362_v33, %v361_v31  ;;  %v1423_v39 = vmul.f32 %v288_v36, %v237_v30  ;;  %v1430_v43 = vmul.f32 %v293_v34, %v238_v35 }
  0xcb   : > { %v378_v42 = vadd.f32 %v377_v38, %v363_v37  ;;  %v365_v47 = vmul.f32 %v1423_v39, %v1423_v39  ;;  %v366_v51 = vmul.f32 %v1430_v43, %v1430_v43 }
  0xcc   : > { %v303_v44 = vpop.permute.xlu1 %302  ;;  %v298_v46 = vpop.permute.xlu0 %297 }
  0xcd   : > { %v379_v48 = vadd.f32 %v378_v42, %v364_v41  ;;  %v1437_v49 = vmul.f32 %v298_v46, %v239_v40  ;;  %v1444_v53 = vmul.f32 %v303_v44, %v240_v45 }
  0xcf   : > { %v380_v52 = vadd.f32 %v379_v48, %v365_v47  ;;  %v367_v57 = vmul.f32 %v1437_v49, %v1437_v49  ;;  %v368_v61 = vmul.f32 %v1444_v53, %v1444_v53 }
  0xd0   : > { %v313_v54 = vpop.permute.xlu1 %312  ;;  %v308_v56 = vpop.permute.xlu0 %307 }
  0xd1   : > { %v381_v58 = vadd.f32 %v380_v52, %v366_v51  ;;  %v1451_v59 = vmul.f32 %v308_v56, %v241_v50  ;;  %v1458_v63 = vmul.f32 %v313_v54, %v242_v55 }
  0xd3   : > { %v382_v62 = vadd.f32 %v381_v58, %v367_v57  ;;  %v369_v3 = vmul.f32 %v1451_v59, %v1451_v59  ;;  %v370_v7 = vmul.f32 %v1458_v63, %v1458_v63 }
  0xd4   : > { %v323_v0 = vpop.permute.xlu1 %322  ;;  %v318_v2 = vpop.permute.xlu0 %317 }
  0xd5   : > { %v383_v4 = vadd.f32 %v382_v62, %v368_v61  ;;  %v1465_v5 = vmul.f32 %v318_v2, %v243_v60  ;;  %v1472_v9 = vmul.f32 %v323_v0, %v244_v1  ;;  %v433_v2 = vld [vmem:[%s1378_s21 + $0x8] sm:$0xff] }
  0xd7   : > { %v384_v8 = vadd.f32 %v383_v4, %v369_v3  ;;  %v371_v13 = vmul.f32 %v1465_v5, %v1465_v5  ;;  %v372_v17 = vmul.f32 %v1472_v9, %v1472_v9  ;;  %v449_v3 = vld [vmem:[%s1378_s21 + $0x88] sm:$0xff]  ;;  %v434_v4 = vld [vmem:[%s1378_s21 + $0x10] sm:$0xff] }
  0xd8   : > { %v333_v10 = vpop.permute.xlu1 %332  ;;  %v328_v12 = vpop.permute.xlu0 %327 }
  0xd9   : > { %v385_v14 = vadd.f32 %v384_v8, %v370_v7  ;;  %v1479_v15 = vmul.f32 %v328_v12, %v245_v6  ;;  %v358_v19 = vmul.f32 %v333_v10, %v246_v11  ;;  %v435_v6 = vld [vmem:[%s1378_s21 + $0x18] sm:$0xff]  ;;  %v436_v8 = vld [vmem:[%s1378_s21 + $0x20] sm:$0xff]  ;;  %v437_v10 = vld [vmem:[%s1378_s21 + $0x28] sm:$0xff] }
  0xda   : > { %v451_v7 = vld [vmem:[%s1378_s21 + $0x98] sm:$0xff]  ;;  %v453_v11 = vld [vmem:[%s1378_s21 + $0xa8] sm:$0xff]  ;;  %v438_v12 = vld [vmem:[%s1378_s21 + $0x30] sm:$0xff] }
  0xdb   : > { %v386_v18 = vadd.f32 %v385_v14, %v371_v13  ;;  %v373_v23 = vmul.f32 %v1479_v15, %v1479_v15  ;;  %v374_v27 = vmul.f32 %v358_v19, %v358_v19  ;;  %v454_v13 = vld [vmem:[%s1378_s21 + $0xb0] sm:$0xff]  ;;  %v439_v14 = vld [vmem:[%s1378_s21 + $0x38] sm:$0xff] }
  0xdc   : > { %v343_v20 = vpop.permute.xlu1 %342  ;;  %v338_v22 = vpop.permute.xlu0 %337 }
  0xdd   : > { %v387_v25 = vadd.f32 %v386_v18, %v372_v17  ;;  %v359_v26 = vmul.f32 %v338_v22, %v247_v16  ;;  %v360_v31 = vmul.f32 %v343_v20, %v248_v21  ;;  %v440_v16 = vld [vmem:[%s1378_s21 + $0x40] sm:$0xff]  ;;  %v441_v18 = vld [vmem:[%s1378_s21 + $0x48] sm:$0xff]  ;;  %v442_v20 = vld [vmem:[%s1378_s21 + $0x50] sm:$0xff] }
  0xde   : > { %v456_v17 = vld [vmem:[%s1378_s21 + $0xc0] sm:$0xff]  ;;  %v458_v21 = vld [vmem:[%s1378_s21 + $0xd0] sm:$0xff]  ;;  %v443_v22 = vld [vmem:[%s1378_s21 + $0x58] sm:$0xff] }
  0xdf   : > { %v388_v30 = vadd.f32 %v387_v25, %v373_v23  ;;  %v375_v33 = vmul.f32 %v359_v26, %v359_v26  ;;  %v376_v35 = vmul.f32 %v360_v31, %v360_v31  ;;  %v459_v23 = vld [vmem:[%s1378_s21 + $0xd8] sm:$0xff]  ;;  %v444_v25 = vld [vmem:[%s1378_s21 + $0x60] sm:$0xff] }
  0xe1   : > { %v389_v34 = vadd.f32 %v388_v30, %v374_v27  ;;  %v445_v27 = vld [vmem:[%s1378_s21 + $0x68] sm:$0xff] }
  0xe2   : > { %v461_v30 = vld [vmem:[%s1378_s21 + $0xe8] sm:$0xff] }
  0xe3   : > { %v390_v36 = vadd.f32 %v389_v34, %v375_v33  ;;  %v462_v33 = vld [vmem:[%s1378_s21 + $0xf0] sm:$0xff]  ;;  %v447_v34 = vld [vmem:[%s1378_s21 + $0x78] sm:$0xff] }
  0xe5   : > { %v391_v37 = vadd.f32 %v390_v36, %v376_v35  ;;  %v463_v35 = vld [vmem:[%s1378_s21 + $0xf8] sm:$0xff] }
  0xe7   : > { %v392_v38 = vrot.slane %v391_v37, 4 }
  0xe9   : > { %v393_v40 = vadd.f32 %v392_v38, %v391_v37 }
  0xeb   : > { %v394_v41 = vrot.slane %v393_v40, 2 }
  0xed   : > { %v395_v42 = vadd.f32 %v394_v41, %v393_v40 }
  0xef   : > { %v396_v44 = vrot.slane %v395_v42, 1 }
  0xf1   : > { %v397_v45 = vadd.f32 %v396_v44, %v395_v42 }
  0xf3   : > { %v398_v46 = vadd.f32 1e-08, %v397_v45 }
  0xf5   : > { %1117 = vrsqrt.f32 %v398_v46 }
  0xff   : > { %v1118_v47 = vpop.eup %1117 }
 0x100   : > { %v400_v48 = vmul.f32 %v1118_v47, %v1400_v24  ;;  %v401_v50 = vmul.f32 %v1118_v47, %v1407_v29  ;;  %v402_v51 = vmul.f32 %v1118_v47, %v1405_v28  ;;  %v403_v52 = vmul.f32 %v1118_v47, %v1414_v32 }
 0x101   : > { %v404_v56 = vmul.f32 %v1118_v47, %v1423_v39  ;;  %v405_v57 = vmul.f32 %v1118_v47, %v1430_v43  ;;  %v406_v24 = vmul.f32 %v1118_v47, %v1437_v49  ;;  %v407_v29 = vmul.f32 %v1118_v47, %v1444_v53 }
 0x102   : > { %v1000_v54 = vpack.c.bf16 %v401_v50, %v400_v48  ;;  %v1004_v55 = vpack.c.bf16 %v403_v52, %v402_v51  ;;  %v408_v32 = vmul.f32 %v1118_v47, %v1451_v59  ;;  %v409_v39 = vmul.f32 %v1118_v47, %v1458_v63 }
 0x103   : > { %v1008_v58 = vpack.c.bf16 %v405_v57, %v404_v56  ;;  %v1012_v28 = vpack.c.bf16 %v407_v29, %v406_v24  ;;  %v410_v60 = vmul.f32 %v1118_v47, %v1465_v5  ;;  %v411_v49 = vmul.f32 %v1118_v47, %v1472_v9  ;;  %v450_v5 = vld [vmem:[%s1378_s21 + $0x90] sm:$0xff]  ;;  %v452_v9 = vld [vmem:[%s1378_s21 + $0xa0] sm:$0xff] }
 0x104   : > { %1001 = vmatprep.subr.bf16.mxu0 %v1000_v54  ;;  %1032 = vmatprep.subr.bf16.mxu1 %v1000_v54  ;;  %v1016_v43 = vpack.c.bf16 %v409_v39, %v408_v32  ;;  %v412_v61 = vmul.f32 %v1118_v47, %v1479_v15  ;;  %v413_v62 = vmul.f32 %v1118_v47, %v358_v19  ;;  %v455_v15 = vld [vmem:[%s1378_s21 + $0xb8] sm:$0xff]  ;;  %v457_v19 = vld [vmem:[%s1378_s21 + $0xc8] sm:$0xff] }
 0x105   : > { %1003 = vmatpush3.bf16.msra.mxu0 %v1000_v54  ;;  %1040 = vmatpush3.bf16.msra.mxu1 %v1000_v54  ;;  %v1020_v53 = vpack.c.bf16 %v411_v49, %v410_v60  ;;  %v414_v59 = vmul.f32 %v1118_v47, %v359_v26  ;;  %v415_v63 = vmul.f32 %v1118_v47, %v360_v31  ;;  %v460_v26 = vld [vmem:[%s1378_s21 + $0xe0] sm:$0xff]  ;;  %v446_v31 = vld [vmem:[%s1378_s21 + $0x70] sm:$0xff]  ;;  %s753_s21 = sshll.u32 %s1536_s30, 4  ;;  %s1573_s21 = int_to_ptr.vmem [resolvable:$true] %s753_s21 }
 0x106   : > { %1005 = vmatprep.subr.bf16.mxu0 %v1004_v55  ;;  %1033 = vmatprep.subr.bf16.mxu1 %v1004_v55  ;;  %v1024_v0 = vpack.c.bf16 %v413_v62, %v412_v61  ;;  %s1149_s19 = scalar_lea.vmem %s1573_s21, 4096  ;;  %p1156_p13 = scmp.lt.s32.totalorder %s1573_s21, %s1154_s8 }
 0x107   : > { %v1028_v1 = vpack.c.bf16 %v415_v63, %v414_v59  ;;  %p1150_p8 = scmp.ne.s32.totalorder %s1573_s21, %s1149_s19  ;;  %p1157_p2 = scmp.lt.s32.totalorder %s1155_s9, %s1149_s19 }
 0x109   : > { %1007 = vmatpush3.bf16.msra.mxu0 %v1004_v55  ;;  %1041 = vmatpush3.bf16.msra.mxu1 %v1004_v55  ;;  %p1151_p0 = pnand %p1150_p8, %p1637_p11  ;;  %p1158_p5 = por %p1157_p2, %p1156_p13 }
 0x10a   : > { %1009 = vmatprep.subr.bf16.mxu0 %v1008_v58  ;;  %1034 = vmatprep.subr.bf16.mxu1 %v1008_v58 }
 0x10b   : > { %p1152_p6 = pneg %p1151_p0 }
 0x10d   : > { %1011 = vmatpush3.bf16.msra.mxu0 %v1008_v58  ;;  %1042 = vmatpush3.bf16.msra.mxu1 %v1008_v58  ;;  %p1159_p4 = pnand %p1158_p5, %p1152_p6 }
 0x10e   : > { %1013 = vmatprep.subr.bf16.mxu0 %v1012_v28  ;;  %1035 = vmatprep.subr.bf16.mxu1 %v1012_v28 }
 0x111   : > { %1015 = vmatpush3.bf16.msra.mxu0 %v1012_v28  ;;  %1043 = vmatpush3.bf16.msra.mxu1 %v1012_v28 }
 0x112   : > { %1017 = vmatprep.subr.bf16.mxu0 %v1016_v43  ;;  %1036 = vmatprep.subr.bf16.mxu1 %v1016_v43 }
 0x115   : > { %1019 = vmatpush3.bf16.msra.mxu0 %v1016_v43  ;;  %1044 = vmatpush3.bf16.msra.mxu1 %v1016_v43 }
 0x116   : > { %1021 = vmatprep.subr.bf16.mxu0 %v1020_v53  ;;  %1037 = vmatprep.subr.bf16.mxu1 %v1020_v53 }
 0x119   : > { %1023 = vmatpush3.bf16.msra.mxu0 %v1020_v53  ;;  %1045 = vmatpush3.bf16.msra.mxu1 %v1020_v53 }
 0x11a   : > { %1025 = vmatprep.subr.bf16.mxu0 %v1024_v0  ;;  %1038 = vmatprep.subr.bf16.mxu1 %v1024_v0 }
 0x11d   : > { %1027 = vmatpush3.bf16.msra.mxu0 %v1024_v0  ;;  %1046 = vmatpush3.bf16.msra.mxu1 %v1024_v0 }
 0x11e   : > { %1029 = vmatprep.subr.bf16.mxu0 %v1028_v1  ;;  %1039 = vmatprep.subr.bf16.mxu1 %v1028_v1 }
 0x121   : > { %1031 = vmatpush3.bf16.msra.mxu0 %v1028_v1  ;;  %1047 = vmatpush3.bf16.msra.mxu1 %v1028_v1 }
 0x124   : > { %953 = vmatmul.mubr.f32.vlgmr.msra.gmra.mrb[0].mxu0 %v433_v2  ;;  %977 = vmatmul.mubr.f32.vlgmr.msra.gmra.mrb[0].mxu1 %v449_v3 }
 0x125   : > { %955 = vmatprep.mubr.f32.mxu0 %v434_v4  ;;  %979 = vmatprep.mubr.f32.mxu1 %v450_v5 }
 0x128   : > { %956 = vmatmul.mubr.f32.gmra.mrb[2].mxu0 %v435_v6  ;;  %980 = vmatmul.mubr.f32.gmra.mrb[2].mxu1 %v451_v7 }
 0x129   : > { %958 = vmatprep.mubr.f32.mxu0 %v436_v8  ;;  %982 = vmatprep.mubr.f32.mxu1 %v452_v9 }
 0x12c   : > { %959 = vmatmul.mubr.f32.gmra.mrb[4].mxu0 %v437_v10  ;;  %983 = vmatmul.mubr.f32.gmra.mrb[4].mxu1 %v453_v11 }
 0x12d   : > { %961 = vmatprep.mubr.f32.mxu0 %v438_v12  ;;  %985 = vmatprep.mubr.f32.mxu1 %v454_v13 }
 0x130   : > { %962 = vmatmul.mubr.f32.gmra.mrb[6].mxu0 %v439_v14  ;;  %986 = vmatmul.mubr.f32.gmra.mrb[6].mxu1 %v455_v15 }
 0x131   : > { %964 = vmatprep.mubr.f32.mxu0 %v440_v16  ;;  %988 = vmatprep.mubr.f32.mxu1 %v456_v17 }
 0x134   : > { %965 = vmatmul.mubr.f32.gmra.mrb[8].mxu0 %v441_v18  ;;  %989 = vmatmul.mubr.f32.gmra.mrb[8].mxu1 %v457_v19 }
 0x135   : > { %967 = vmatprep.mubr.f32.mxu0 %v442_v20  ;;  %991 = vmatprep.mubr.f32.mxu1 %v458_v21 }
 0x138   : > { %968 = vmatmul.mubr.f32.gmra.mrb[10].mxu0 %v443_v22  ;;  %992 = vmatmul.mubr.f32.gmra.mrb[10].mxu1 %v459_v23 }
 0x139   : > { %970 = vmatprep.mubr.f32.mxu0 %v444_v25  ;;  %994 = vmatprep.mubr.f32.mxu1 %v460_v26 }
 0x13c   : > { %971 = vmatmul.mubr.f32.gmra.mrb[12].mxu0 %v445_v27  ;;  %995 = vmatmul.mubr.f32.gmra.mrb[12].mxu1 %v461_v30 }
 0x13d   : > { %973 = vmatprep.mubr.f32.mxu0 %v446_v31  ;;  %997 = vmatprep.mubr.f32.mxu1 %v462_v33 }
 0x140   : > { %974 = vmatmul.mubr.f32.gmra.mrb[14].mxu0 %v447_v34  ;;  %998 = vmatmul.mubr.f32.gmra.mrb[14].mxu1 %v463_v35 }
 0x1f7   : > { %v954_v36 = vpop.f32.mrb[0].mxu0  ;;  %v978_v37 = vpop.f32.mrb[0].mxu1 }
 0x1f8   : > { %706 = vst [vmem:[%s1536_s30 + $0x8] sm:$0xff] %v954_v36  ;;  %722 = vst [vmem:[%s1536_s30 + $0x88] sm:$0xff] %v978_v37  ;;  %v546_v38 = vpop.f32.mrb[1].mxu0  ;;  %v626_v40 = vpop.f32.mrb[1].mxu1 }
 0x1f9   : > { %705 = vst [vmem:[%s1536_s30] sm:$0xff] %v546_v38  ;;  %721 = vst [vmem:[%s1536_s30 + $0x80] sm:$0xff] %v626_v40 }
 0x1fb   : > { %v957_v41 = vpop.f32.mrb[2].mxu0  ;;  %v981_v42 = vpop.f32.mrb[2].mxu1 }
 0x1fc   : > { %708 = vst [vmem:[%s1536_s30 + $0x18] sm:$0xff] %v957_v41  ;;  %724 = vst [vmem:[%s1536_s30 + $0x98] sm:$0xff] %v981_v42  ;;  %v556_v44 = vpop.f32.mrb[3].mxu0  ;;  %v636_v45 = vpop.f32.mrb[3].mxu1 }
 0x1fd   : > { %707 = vst [vmem:[%s1536_s30 + $0x10] sm:$0xff] %v556_v44  ;;  %723 = vst [vmem:[%s1536_s30 + $0x90] sm:$0xff] %v636_v45 }
 0x1ff   : > { %v960_v46 = vpop.f32.mrb[4].mxu0  ;;  %v984_v47 = vpop.f32.mrb[4].mxu1 }
 0x200   : > { %710 = vst [vmem:[%s1536_s30 + $0x28] sm:$0xff] %v960_v46  ;;  %726 = vst [vmem:[%s1536_s30 + $0xa8] sm:$0xff] %v984_v47  ;;  %v566_v48 = vpop.f32.mrb[5].mxu0  ;;  %v646_v50 = vpop.f32.mrb[5].mxu1 }
 0x201   : > { %709 = vst [vmem:[%s1536_s30 + $0x20] sm:$0xff] %v566_v48  ;;  %725 = vst [vmem:[%s1536_s30 + $0xa0] sm:$0xff] %v646_v50 }
 0x203   : > { %v963_v51 = vpop.f32.mrb[6].mxu0  ;;  %v987_v52 = vpop.f32.mrb[6].mxu1 }
 0x204   : > { %712 = vst [vmem:[%s1536_s30 + $0x38] sm:$0xff] %v963_v51  ;;  %728 = vst [vmem:[%s1536_s30 + $0xb8] sm:$0xff] %v987_v52  ;;  %v576_v54 = vpop.f32.mrb[7].mxu0  ;;  %v656_v55 = vpop.f32.mrb[7].mxu1 }
 0x205   : > { %711 = vst [vmem:[%s1536_s30 + $0x30] sm:$0xff] %v576_v54  ;;  %727 = vst [vmem:[%s1536_s30 + $0xb0] sm:$0xff] %v656_v55 }
 0x207   : > { %v966_v56 = vpop.f32.mrb[8].mxu0  ;;  %v990_v57 = vpop.f32.mrb[8].mxu1 }
 0x208   : > { %714 = vst [vmem:[%s1536_s30 + $0x48] sm:$0xff] %v966_v56  ;;  %730 = vst [vmem:[%s1536_s30 + $0xc8] sm:$0xff] %v990_v57  ;;  %v586_v58 = vpop.f32.mrb[9].mxu0  ;;  %v666_v24 = vpop.f32.mrb[9].mxu1 }
 0x209   : > { %713 = vst [vmem:[%s1536_s30 + $0x40] sm:$0xff] %v586_v58  ;;  %729 = vst [vmem:[%s1536_s30 + $0xc0] sm:$0xff] %v666_v24 }
 0x20b   : > { %v969_v29 = vpop.f32.mrb[10].mxu0  ;;  %v993_v28 = vpop.f32.mrb[10].mxu1 }
 0x20c   : > { %716 = vst [vmem:[%s1536_s30 + $0x58] sm:$0xff] %v969_v29  ;;  %732 = vst [vmem:[%s1536_s30 + $0xd8] sm:$0xff] %v993_v28  ;;  %v596_v32 = vpop.f32.mrb[11].mxu0  ;;  %v676_v39 = vpop.f32.mrb[11].mxu1 }
 0x20d   : > { %715 = vst [vmem:[%s1536_s30 + $0x50] sm:$0xff] %v596_v32  ;;  %731 = vst [vmem:[%s1536_s30 + $0xd0] sm:$0xff] %v676_v39 }
 0x20f   : > { %v972_v43 = vpop.f32.mrb[12].mxu0  ;;  %v996_v60 = vpop.f32.mrb[12].mxu1 }
 0x210   : > { %718 = vst [vmem:[%s1536_s30 + $0x68] sm:$0xff] %v972_v43  ;;  %734 = vst [vmem:[%s1536_s30 + $0xe8] sm:$0xff] %v996_v60  ;;  %v606_v49 = vpop.f32.mrb[13].mxu0  ;;  %v686_v53 = vpop.f32.mrb[13].mxu1 }
 0x211   : > { %717 = vst [vmem:[%s1536_s30 + $0x60] sm:$0xff] %v606_v49  ;;  %733 = vst [vmem:[%s1536_s30 + $0xe0] sm:$0xff] %v686_v53 }
 0x213   : > { %v975_v61 = vpop.f32.mrb[14].mxu0  ;;  %v999_v62 = vpop.f32.mrb[14].mxu1 }
 0x214   : > { %720 = vst [vmem:[%s1536_s30 + $0x78] sm:$0xff] %v975_v61  ;;  %736 = vst [vmem:[%s1536_s30 + $0xf8] sm:$0xff] %v999_v62  ;;  %v616_v59 = vpop.f32.mrb[15].mxu0  ;;  %v696_v63 = vpop.f32.mrb[15].mxu1 }
 0x215   : > { %719 = vst [vmem:[%s1536_s30 + $0x70] sm:$0xff] %v616_v59  ;;  %735 = vst [vmem:[%s1536_s30 + $0xf0] sm:$0xff] %v696_v63 }
 0x216   : > { %1162 = shalt.err (!%p1159_p4)
}
 0x217   : > { %s1163_s10 = scalar_lea.hbm %s1571_s7, 4096  ;;  %s1167_s23 = scalar_lea.hbm %s1629_s3, 8192 }
 0x218   : > { %p1164_p7 = scmp.ne.s32.totalorder %s1571_s7, %s1163_s10  ;;  %p1168_p1 = scmp.lt.u32.totalorder %s1571_s7, %s1629_s3 }
 0x219   : > { %p1169_p3 = scmp.lt.u32.totalorder %s1167_s23, %s1163_s10  ;;  %p1171_p8 = scmp.lt.u32.totalorder %s1163_s10, %s1571_s7 }
 0x21a   : > { %p1165_p10 = pnand %p1164_p7, %p1637_p11 }
 0x21b   : > { %p1170_p9 = por %p1169_p3, %p1168_p1 }
 0x21c   : > { %p1166_p12 = pneg %p1165_p10 }
 0x21d   : > { %p1172_p0 = por %p1171_p8, %p1170_p9 }
 0x21f   : > { %p1173_p6 = pnand %p1172_p0, %p1166_p12 }
 0x221   : > { %1176 = shalt.err (!%p1173_p6)
}
 0x222   : > { %s1238_s30 = smov 128   ;;  %s1239_s18 = smov 8  }
 0x223   : > { %1050 = dma.vmem_to_hbm [thread:$0]  (%p1637_p11), %s1573_s21, 4096, %s1571_s7, %s738_s15, %s1238_s30, %s1238_s30, %s1239_s18  }
 0x224 PF: > { %s768_s4 = sand.u32 1, %s1211_s12   ;;  %p1638_p13 = scmp.ne.s32.totalorder %s1634_s27, 0 }
 0x225   : > { %p1639_p2 = scmp.ge.s32.totalorder %s1231_s17, 2  ;;  %s769_s5 = scalar_lea.sflag [#allocation5], %s768_s4 }
 0x227   : > { %p1057_p5 = pnand %p1639_p2, %p1638_p13 }
 0x229   : > { %1206 = dma.done.wait (!%p1057_p5), %s769_s5, 4096  }
 0x22a   : > { %1208 = vsyncadd (!%p1057_p5), %s769_s5, 4294963200  ;;  %s19_s17 = sadd.s32 1, %s1231_s17   ;;  %s1640_s12 = smov %s1215_s13 }
 0x22b   : > { %p16_p4 = scmp.ge.s32.totalorder %s19_s17, 4   ;;  %s1641_s13 = smov %s1219_s14 }
 0x22c   : > { %s1642_s14 = smov %s1316_s26  ;;  %s1643_s15 = smov %s1227_s16 }
 0x22d   : > { %s1644_s16 = smov %s1646_s20  ;;  %18 = sbr.rel (!%p16_p4) target bundleno = 6 (0x6), region = 84 }
 0x234   :  { %774 = vsyncpa [#allocation4], 1 }
 0x235   :  { %776 = vsyncpa [#allocation4 + $0x1], 1 }
 0x236   :  { %777 = vsyncpa [#allocation5], 1 }
 0x237   :  { %779 = vsyncpa [#allocation5 + $0x1], 1 }

</bundles_post_ra>
